<compile_context>
chip_gen: v7x
topology: tpu7x:2x2x1
jax: 0.10.0
libtpu: 0.0.40
codegen_flags: <defaults>
</compile_context>

<pallas_src>
import jax
import jax.numpy as jnp
from jax.experimental import pallas as pl
from jax.experimental.pallas import tpu as pltpu

LANE = 128
SUBLANE = 8


def gnn_kernel(a_ref, x_ref, w1_ref, b1_ref, pa_ref, w2_ref, b2_ref,
               out_ref, acc_ref):
    i = pl.program_id(0)

    @pl.when(i == 0)
    def _init():
        acc_ref[...] = jnp.zeros_like(acc_ref)

    # Layer 1 (GCNConv + ReLU) for this tile of node rows.
    # (A_tile @ X) first: the N^2 contraction runs over C_in (<= hidden).
    ax = jnp.dot(a_ref[...], x_ref[...], preferred_element_type=jnp.float32)
    h = jnp.dot(ax.astype(jnp.bfloat16), w1_ref[...],
                preferred_element_type=jnp.float32)
    h = jnp.maximum(h + b1_ref[...], 0.0)                       # f32 VPU math

    # global_mean_pool folded through the layer-2 propagation:
    # acc += (P @ A)[:, tile] @ h_tile   -> (B_pad, H_pad) accumulator.
    acc_ref[...] += jnp.dot(pa_ref[...], h, preferred_element_type=jnp.float32)

    # Epilogue: tiny (B, H) @ (H, C_out) + bias, lane-dense f32 store.
    @pl.when(i == pl.num_programs(0) - 1)
    def _finalize():
        out_ref[...] = (
            jnp.dot(acc_ref[...], w2_ref[...], preferred_element_type=jnp.float32)
            + b2_ref[...]
        )


def _round_up(x, m):
    return ((x + m - 1) // m) * m


def _pad2(a, rows, cols):
    return jnp.pad(a, ((0, rows - a.shape[0]), (0, cols - a.shape[1])))


def build_normalized_adjacency(edge_index, num_nodes):
    """Dense GCN-normalized adjacency: D^{-1/2} (A + I) D^{-1/2}.

    Duplicate edges sum their weight (matches PyG gcn_norm for unweighted graphs).
    """
    src, dst = edge_index[0], edge_index[1]
    a = jnp.zeros((num_nodes, num_nodes), jnp.float32)
    # messages flow src -> dst: out[dst] += norm * x[src]  =>  A[dst, src] = 1
    a = a.at[dst, src].add(1.0)
    a = a + jnp.eye(num_nodes, dtype=jnp.float32)               # add self loops
    deg = jnp.sum(a, axis=1)
    dinv = jnp.where(deg > 0, 1.0 / jnp.sqrt(deg), 0.0)
    return dinv[:, None] * a * dinv[None, :]


def build_pool_matrix(batch, num_graphs):
    """P[b, n] = 1/count_b if batch[n] == b else 0  (global_mean_pool)."""
    onehot = (batch[None, :] == jnp.arange(num_graphs)[:, None]).astype(jnp.float32)
    counts = jnp.sum(onehot, axis=1, keepdims=True)
    return onehot / jnp.maximum(counts, 1.0)


def graph_encoder_forward(x, edge_index, batch, w1, b1, w2, b2, num_graphs,
                          *, tile_n=128):
    num_nodes, cin = x.shape
    hidden = w1.shape[1]
    cout = w2.shape[1]

    # ---- graph glue in plain JAX --------------------------------------------
    a_hat = build_normalized_adjacency(edge_index, num_nodes)   # (N, N) f32
    pool = build_pool_matrix(batch, num_graphs)                 # (B, N) f32
    pa = pool @ a_hat                                           # (B, N) pooling hoist

    # ---- pad to MXU/lane friendly shapes ------------------------------------
    n_p = _round_up(num_nodes, tile_n)
    cin_p = _round_up(cin, LANE)
    h_p = _round_up(hidden, LANE)
    cout_p = _round_up(cout, LANE)
    b_p = _round_up(num_graphs, SUBLANE)

    a_p = _pad2(a_hat, n_p, n_p).astype(jnp.bfloat16)           # big operand -> bf16
    x_p = _pad2(x, n_p, cin_p).astype(jnp.bfloat16)
    w1_p = _pad2(w1, cin_p, h_p).astype(jnp.bfloat16)
    b1_p = _pad2(b1, 1, h_p).astype(jnp.float32)
    pa_p = _pad2(pa, b_p, n_p).astype(jnp.float32)              # small, keep f32
    w2_p = _pad2(w2, h_p, cout_p).astype(jnp.float32)
    b2_p = _pad2(b2, 1, cout_p).astype(jnp.float32)

    grid = (n_p // tile_n,)                                     # node-row tiles of A

    grid_spec = pltpu.PrefetchScalarGridSpec(
        num_scalar_prefetch=0,
        grid=grid,
        in_specs=[
            pl.BlockSpec((tile_n, n_p), lambda i: (i, 0)),      # A_hat row tile
            pl.BlockSpec((n_p, cin_p), lambda i: (0, 0)),       # X (resident)
            pl.BlockSpec((cin_p, h_p), lambda i: (0, 0)),       # W1
            pl.BlockSpec((1, h_p), lambda i: (0, 0)),           # b1
            pl.BlockSpec((b_p, tile_n), lambda i: (0, i)),      # (P @ A) column tile
            pl.BlockSpec((h_p, cout_p), lambda i: (0, 0)),      # W2
            pl.BlockSpec((1, cout_p), lambda i: (0, 0)),        # b2
        ],
        out_specs=pl.BlockSpec((b_p, cout_p), lambda i: (0, 0)),
        scratch_shapes=[pltpu.VMEM((b_p, h_p), jnp.float32)],   # pooled-h accumulator
    )

    out_p = pl.pallas_call(
        gnn_kernel,
        out_shape=jax.ShapeDtypeStruct((b_p, cout_p), jnp.float32),
        grid_spec=grid_spec,
        compiler_params=pltpu.CompilerParams(
            dimension_semantics=("arbitrary",),                 # reduction into out
        ),
    )(a_p, x_p, w1_p, b1_p, pa_p, w2_p, b2_p)

    return out_p[:num_graphs, :cout]


if __name__ == "__main__":
    key = jax.random.PRNGKey(0)

    # Small synthetic problem consistent with the module's forward.
    in_channels, hidden_channels, out_channels = 8, 32, 16
    nodes_per_graph, num_graphs = 8, 2
    num_nodes = nodes_per_graph * num_graphs

    k_x, k_w1, k_w2 = jax.random.split(key, 3)
    x = jax.random.normal(k_x, (num_nodes, in_channels), jnp.float32)

    # Undirected ring within each graph (both directions).
    src_list, dst_list = [], []
    for g in range(num_graphs):
        base = g * nodes_per_graph
        for i in range(nodes_per_graph):
            u = base + i
            v = base + (i + 1) % nodes_per_graph
            src_list += [u, v]
            dst_list += [v, u]
    edge_index = jnp.array([src_list, dst_list], dtype=jnp.int32)

    # Graph-membership vector for global_mean_pool.
    batch = jnp.repeat(jnp.arange(num_graphs, dtype=jnp.int32), nodes_per_graph)

    # GCNConv parameters: weight (C_in, C_out) + bias.
    w1 = jax.random.normal(k_w1, (in_channels, hidden_channels), jnp.float32) * 0.1
    b1 = jnp.zeros((1, hidden_channels), jnp.float32)
    w2 = jax.random.normal(k_w2, (hidden_channels, out_channels), jnp.float32) * 0.1
    b2 = jnp.zeros((1, out_channels), jnp.float32)

    out = graph_encoder_forward(x, edge_index, batch, w1, b1, w2, b2, num_graphs)
    out = jax.block_until_ready(out)

    # Pure-JAX f32 reference (unfused, unpadded).
    a_hat = build_normalized_adjacency(edge_index, num_nodes)
    pool_mat = build_pool_matrix(batch, num_graphs)
    h_ref = jnp.maximum(a_hat @ x @ w1 + b1, 0.0)
    z_ref = a_hat @ h_ref @ w2 + b2
    ref = pool_mat @ z_ref

    assert out.shape == (num_graphs, out_channels)
    # bf16 matmul inputs (f32 accumulation) -> loosened tolerance vs. f32 reference.
    assert jnp.allclose(out, ref, atol=2e-2, rtol=2e-2)

    print("KERNEL_OK")
</pallas_src>

<mosaic_0001>
module attributes {stable_mosaic.version = 11 : i64} {
  func.func @gnn_kernel(%arg0: i32, %arg1: memref<128x128xbf16, #tpu.memory_space<vmem>>, %arg2: memref<128x128xbf16, #tpu.memory_space<vmem>>, %arg3: memref<128x128xbf16, #tpu.memory_space<vmem>>, %arg4: memref<1x128xf32, #tpu.memory_space<vmem>>, %arg5: memref<8x128xf32, #tpu.memory_space<vmem>>, %arg6: memref<128x128xf32, #tpu.memory_space<vmem>>, %arg7: memref<1x128xf32, #tpu.memory_space<vmem>>, %arg8: memref<8x128xf32, #tpu.memory_space<vmem>>, %arg9: memref<8x128xf32, #tpu.memory_space<vmem>>) attributes {dimension_semantics = [#tpu.dimension_semantics<arbitrary>], iteration_bounds = array<i64: 1>, scalar_prefetch = 0 : i64, scratch_operands = 1 : i64, tpu.core_type = #tpu.core_type<tc>, window_params = [{transform_indices = @transform_0, window_bounds = array<i64: 128, 128>}, {pipeline_mode = #tpu.pipeline_mode<synchronous>, transform_indices = @transform_1, window_bounds = array<i64: 128, 128>}, {pipeline_mode = #tpu.pipeline_mode<synchronous>, transform_indices = @transform_2, window_bounds = array<i64: 128, 128>}, {pipeline_mode = #tpu.pipeline_mode<synchronous>, transform_indices = @transform_3, window_bounds = array<i64: 1, 128>}, {transform_indices = @transform_4, window_bounds = array<i64: 8, 128>}, {pipeline_mode = #tpu.pipeline_mode<synchronous>, transform_indices = @transform_5, window_bounds = array<i64: 128, 128>}, {pipeline_mode = #tpu.pipeline_mode<synchronous>, transform_indices = @transform_6, window_bounds = array<i64: 1, 128>}, {pipeline_mode = #tpu.pipeline_mode<synchronous>, transform_indices = @transform_7, window_bounds = array<i64: 8, 128>}]} {
    %c0_i32 = arith.constant 0 : i32
    %0 = arith.cmpi eq, %arg0, %c0_i32 : i32
    %1 = arith.extui %0 : i1 to i32
    %c0_i32_0 = arith.constant 0 : i32
    %2 = arith.cmpi ne, %1, %c0_i32_0 : i32
    scf.if %2 {
      %cst_19 = arith.constant 0.000000e+00 : f32
      %22 = vector.broadcast %cst_19 : f32 to vector<8x128xf32>
      %c0_20 = arith.constant 0 : index
      %c0_21 = arith.constant 0 : index
      %23 = vector.load %arg9[%c0_20, %c0_21] : memref<8x128xf32, #tpu.memory_space<vmem>>, vector<8x128xf32>
      tpu.vector_store %arg9[%c0_20, %c0_21], %22 {strides = array<i32>} : memref<8x128xf32, #tpu.memory_space<vmem>>, vector<8x128xf32>,
    } else {
    }
    %c0 = arith.constant 0 : index
    %c0_1 = arith.constant 0 : index
    %3 = vector.load %arg1[%c0, %c0_1] : memref<128x128xbf16, #tpu.memory_space<vmem>>, vector<128x128xbf16>
    %c0_2 = arith.constant 0 : index
    %c0_3 = arith.constant 0 : index
    %4 = vector.load %arg2[%c0_2, %c0_3] : memref<128x128xbf16, #tpu.memory_space<vmem>>, vector<128x128xbf16>
    %cst = arith.constant dense<0.000000e+00> : vector<128x128xf32>
    %5 = tpu.matmul %3, %4, %cst {dimension_numbers = #tpu.dot_dimension_numbers<[1], [0], [0], [1], [0, 0, 1, 1], [], []>} : vector<128x128xbf16>, vector<128x128xbf16>, vector<128x128xf32> -> vector<128x128xf32>
    %6 = arith.truncf %5 : vector<128x128xf32> to vector<128x128xbf16>
    %c0_4 = arith.constant 0 : index
    %c0_5 = arith.constant 0 : index
    %7 = vector.load %arg3[%c0_4, %c0_5] : memref<128x128xbf16, #tpu.memory_space<vmem>>, vector<128x128xbf16>
    %cst_6 = arith.constant dense<0.000000e+00> : vector<128x128xf32>
    %8 = tpu.matmul %6, %7, %cst_6 {dimension_numbers = #tpu.dot_dimension_numbers<[1], [0], [0], [1], [0, 0, 1, 1], [], []>} : vector<128x128xbf16>, vector<128x128xbf16>, vector<128x128xf32> -> vector<128x128xf32>
    %c0_7 = arith.constant 0 : index
    %c0_8 = arith.constant 0 : index
    %9 = vector.load %arg4[%c0_7, %c0_8] : memref<1x128xf32, #tpu.memory_space<vmem>>, vector<1x128xf32>
    %10 = vector.broadcast %9 : vector<1x128xf32> to vector<128x128xf32>
    %11 = arith.addf %8, %10 : vector<128x128xf32>
    %cst_9 = arith.constant 0.000000e+00 : f32
    %12 = vector.broadcast %cst_9 : f32 to vector<128x128xf32>
    %13 = arith.maximumf %11, %12 : vector<128x128xf32>
    %c0_10 = arith.constant 0 : index
    %c0_11 = arith.constant 0 : index
    %14 = vector.load %arg9[%c0_10, %c0_11] : memref<8x128xf32, #tpu.memory_space<vmem>>, vector<8x128xf32>
    %c0_12 = arith.constant 0 : index
    %c0_13 = arith.constant 0 : index
    %15 = vector.load %arg5[%c0_12, %c0_13] : memref<8x128xf32, #tpu.memory_space<vmem>>, vector<8x128xf32>
    %cst_14 = arith.constant dense<0.000000e+00> : vector<8x128xf32>
    %16 = tpu.matmul %15, %13, %cst_14 {dimension_numbers = #tpu.dot_dimension_numbers<[1], [0], [0], [1], [0, 0, 1, 1], [], []>} : vector<8x128xf32>, vector<128x128xf32>, vector<8x128xf32> -> vector<8x128xf32>
    %17 = arith.addf %14, %16 : vector<8x128xf32>
    %c0_15 = arith.constant 0 : index
    %c0_16 = arith.constant 0 : index
    %18 = vector.load %arg9[%c0_15, %c0_16] : memref<8x128xf32, #tpu.memory_space<vmem>>, vector<8x128xf32>
    tpu.vector_store %arg9[%c0_15, %c0_16], %17 {strides = array<i32>} : memref<8x128xf32, #tpu.memory_space<vmem>>, vector<8x128xf32>,
    %c0_i32_17 = arith.constant 0 : i32
    %19 = arith.cmpi eq, %arg0, %c0_i32_17 : i32
    %20 = arith.extui %19 : i1 to i32
    %c0_i32_18 = arith.constant 0 : i32
    %21 = arith.cmpi ne, %20, %c0_i32_18 : i32
    scf.if %21 {
      %c0_19 = arith.constant 0 : index
      %c0_20 = arith.constant 0 : index
      %22 = vector.load %arg9[%c0_19, %c0_20] : memref<8x128xf32, #tpu.memory_space<vmem>>, vector<8x128xf32>
      %c0_21 = arith.constant 0 : index
      %c0_22 = arith.constant 0 : index
      %23 = vector.load %arg6[%c0_21, %c0_22] : memref<128x128xf32, #tpu.memory_space<vmem>>, vector<128x128xf32>
      %cst_23 = arith.constant dense<0.000000e+00> : vector<8x128xf32>
      %24 = tpu.matmul %22, %23, %cst_23 {dimension_numbers = #tpu.dot_dimension_numbers<[1], [0], [0], [1], [0, 0, 1, 1], [], []>} : vector<8x128xf32>, vector<128x128xf32>, vector<8x128xf32> -> vector<8x128xf32>
      %c0_24 = arith.constant 0 : index
      %c0_25 = arith.constant 0 : index
      %25 = vector.load %arg7[%c0_24, %c0_25] : memref<1x128xf32, #tpu.memory_space<vmem>>, vector<1x128xf32>
      %26 = vector.broadcast %25 : vector<1x128xf32> to vector<8x128xf32>
      %27 = arith.addf %24, %26 : vector<8x128xf32>
      %c0_26 = arith.constant 0 : index
      %c0_27 = arith.constant 0 : index
      %28 = vector.load %arg8[%c0_26, %c0_27] : memref<8x128xf32, #tpu.memory_space<vmem>>, vector<8x128xf32>
      tpu.vector_store %arg8[%c0_26, %c0_27], %27 {strides = array<i32>} : memref<8x128xf32, #tpu.memory_space<vmem>>, vector<8x128xf32>,
    } else {
    }
    return
  }
  func.func @transform_0(%arg0: i32) -> (i32, i32) {
    %c0_i32 = arith.constant 0 : i32
    %c0_i32_0 = arith.constant 0 : i32
    return %arg0, %c0_i32 : i32, i32
  }
  func.func @transform_1(%arg0: i32) -> (i32, i32) {
    %c0_i32 = arith.constant 0 : i32
    %c0_i32_0 = arith.constant 0 : i32
    %c0_i32_1 = arith.constant 0 : i32
    return %c0_i32, %c0_i32_0 : i32, i32
  }
  func.func @transform_2(%arg0: i32) -> (i32, i32) {
    %c0_i32 = arith.constant 0 : i32
    %c0_i32_0 = arith.constant 0 : i32
    %c0_i32_1 = arith.constant 0 : i32
    return %c0_i32, %c0_i32_0 : i32, i32
  }
  func.func @transform_3(%arg0: i32) -> (i32, i32) {
    %c0_i32 = arith.constant 0 : i32
    %c0_i32_0 = arith.constant 0 : i32
    %c0_i32_1 = arith.constant 0 : i32
    return %c0_i32, %c0_i32_0 : i32, i32
  }
  func.func @transform_4(%arg0: i32) -> (i32, i32) {
    %c0_i32 = arith.constant 0 : i32
    %c0_i32_0 = arith.constant 0 : i32
    return %c0_i32, %arg0 : i32, i32
  }
  func.func @transform_5(%arg0: i32) -> (i32, i32) {
    %c0_i32 = arith.constant 0 : i32
    %c0_i32_0 = arith.constant 0 : i32
    %c0_i32_1 = arith.constant 0 : i32
    return %c0_i32, %c0_i32_0 : i32, i32
  }
  func.func @transform_6(%arg0: i32) -> (i32, i32) {
    %c0_i32 = arith.constant 0 : i32
    %c0_i32_0 = arith.constant 0 : i32
    %c0_i32_1 = arith.constant 0 : i32
    return %c0_i32, %c0_i32_0 : i32, i32
  }
  func.func @transform_7(%arg0: i32) -> (i32, i32) {
    %c0_i32 = arith.constant 0 : i32
    %c0_i32_0 = arith.constant 0 : i32
    %c0_i32_1 = arith.constant 0 : i32
    return %c0_i32, %c0_i32_0 : i32, i32
  }
}

</mosaic_0001>

<bundles_post_ra>
// kernel: tpu_custom_call.1
= control target key start
LH: loop header
LB: loop body
LE: loop exit
PB: predicated region body
PF: predicated region fallthrough
CT: control target
= control target key end

     0   :  { %12 = vsyncpa [#allocation4], 0  ;;  %s1282_s0 = inlined_call_operand.hbm [shape: bf16[128,128], index: 0, kind: input, shape index: {}]   ;;  %s1283_s1 = inlined_call_operand.hbm [shape: bf16[128,128], index: 1, kind: input, shape index: {}]   ;;  %s1284_s2 = inlined_call_operand.hbm [shape: bf16[128,128], index: 2, kind: input, shape index: {}]   ;;  %s1285_s3 = inlined_call_operand.vmem [shape: f32[1,128], index: 3, kind: input, shape index: {}]   ;;  %s1286_s4 = inlined_call_operand.vmem [shape: f32[8,128], index: 4, kind: input, shape index: {}]   ;;  %s1287_s5 = inlined_call_operand.hbm [shape: f32[128,128], index: 5, kind: input, shape index: {}]   ;;  %s1288_s6 = inlined_call_operand.vmem [shape: f32[1,128], index: 6, kind: input, shape index: {}]   ;;  %s1289_s7 = inlined_call_operand.hbm [shape: f32[8,128], index: 7, kind: output, shape index: {}]  }
   0x1   :  { %13 = vsyncpa [#allocation7], 0 }
   0x2   :  { %14 = vsyncpa [#allocation10], 0 }
   0x3   :  { %15 = vsyncpa [#allocation5], 0  ;;  %s1122_s24 = smov [#allocation6]   ;;  %s1123_s26 = smov [#allocation3]  }
   0x4   :  { %s33_s25 = sshll.u32 %s1122_s24, 4  ;;  %s21_s27 = sshll.u32 %s1123_s26, 4  ;;  %s34_s25 = int_to_ptr.vmem [resolvable:$true] %s33_s25  ;;  %s1174_s27 = int_to_ptr.vmem [resolvable:$true] %s21_s27 }
   0x5   :  { %s1004_s30 = scalar_lea.hbm %s1283_s1, 1024 }
   0x6   :  { %p1005_p0 = scmp.ne.s32.totalorder %s1283_s1, %s1004_s30  ;;  %p1008_p1 = scmp.lt.u32.totalorder %s1004_s30, %s1283_s1 }
   0x8   :  { %p1010_p2 = pnand %p1008_p1, %p1005_p0 }
   0xa   :  { %1013 = shalt.err (!%p1010_p2)
}
   0xb   :  { %s1014_s12 = scalar_lea.vmem %s34_s25, 1024  ;;  %p1019_p4 = scmp.lt.s32.totalorder %s34_s25, %s34_s25 }
   0xc   :  { %p1015_p3 = scmp.ne.s32.totalorder %s34_s25, %s1014_s12  ;;  %p1020_p5 = scmp.lt.s32.totalorder %s1014_s12, %s1014_s12 }
   0xe   :  { %p1021_p6 = por %p1020_p5, %p1019_p4 }
  0x10   :  { %p1022_p7 = pnand %p1021_p6, %p1015_p3 }
  0x12   :  { %1025 = shalt.err (!%p1022_p7)
}
  0x13   :  { %s1124_s13 = smov 64   ;;  %s1125_s14 = smov 4  }
  0x14   :  { %39 = dma.hbm_to_vmem [thread:$0]  %s1283_s1, 1024, %s34_s25, [#allocation7], %s1124_s13, %s1124_s13, %s1125_s14  }
  0x15   :  { %s1026_s19 = scalar_lea.hbm %s1282_s0, 1024 }
  0x16   :  { %p1027_p8 = scmp.ne.s32.totalorder %s1282_s0, %s1026_s19  ;;  %p1030_p9 = scmp.lt.u32.totalorder %s1026_s19, %s1282_s0 }
  0x18   :  { %p1032_p10 = pnand %p1030_p9, %p1027_p8 }
  0x1a   :  { %1035 = shalt.err (!%p1032_p10)
}
  0x1b   :  { %s1036_s24 = scalar_lea.vmem %s1174_s27, 1024  ;;  %p1041_p12 = scmp.lt.s32.totalorder %s1174_s27, %s1174_s27 }
  0x1c   :  { %p1037_p11 = scmp.ne.s32.totalorder %s1174_s27, %s1036_s24  ;;  %p1042_p13 = scmp.lt.s32.totalorder %s1036_s24, %s1036_s24 }
  0x1e   :  { %p1043_p0 = por %p1042_p13, %p1041_p12 }
  0x20   :  { %p1044_p1 = pnand %p1043_p0, %p1037_p11 }
  0x22   :  { %1047 = shalt.err (!%p1044_p1)
}
  0x23   :  { %27 = dma.hbm_to_vmem [thread:$0]  %s1282_s0, 1024, %s1174_s27, [#allocation4], %s1124_s13, %s1124_s13, %s1125_s14  }
  0x24   :  { %s1126_s26 = smov [#allocation8]   ;;  %s1127_s29 = smov [#allocation9]  }
  0x25   :  { %s45_s28 = sshll.u32 %s1126_s26, 4  ;;  %s61_s30 = sshll.u32 %s1127_s29, 4  ;;  %s46_s28 = int_to_ptr.vmem [resolvable:$true] %s45_s28  ;;  %s1211_s30 = int_to_ptr.vmem [resolvable:$true] %s61_s30 }
  0x26   :  { %s1048_s10 = scalar_lea.hbm %s1284_s2, 1024 }
  0x27   :  { %p1049_p2 = scmp.ne.s32.totalorder %s1284_s2, %s1048_s10  ;;  %p1052_p3 = scmp.lt.u32.totalorder %s1048_s10, %s1284_s2 }
  0x29   :  { %p1054_p4 = pnand %p1052_p3, %p1049_p2 }
  0x2b   :  { %1057 = shalt.err (!%p1054_p4)
}
  0x2c   :  { %s1058_s0 = scalar_lea.vmem %s46_s28, 1024  ;;  %p1063_p6 = scmp.lt.s32.totalorder %s46_s28, %s46_s28 }
  0x2d   :  { %p1059_p5 = scmp.ne.s32.totalorder %s46_s28, %s1058_s0  ;;  %p1064_p7 = scmp.lt.s32.totalorder %s1058_s0, %s1058_s0 }
  0x2f   :  { %p1065_p8 = por %p1064_p7, %p1063_p6 }
  0x31   :  { %p1066_p9 = pnand %p1065_p8, %p1059_p5 }
  0x33   :  { %1069 = shalt.err (!%p1066_p9)
}
  0x34   :  { %51 = dma.hbm_to_vmem [thread:$0]  %s1284_s2, 1024, %s46_s28, [#allocation7], %s1124_s13, %s1124_s13, %s1125_s14  }
  0x35   :  { %s1070_s20 = scalar_lea.hbm %s1287_s5, 2048 }
  0x36   :  { %p1071_p10 = scmp.ne.s32.totalorder %s1287_s5, %s1070_s20  ;;  %p1074_p11 = scmp.lt.u32.totalorder %s1070_s20, %s1287_s5 }
  0x38   :  { %p1076_p12 = pnand %p1074_p11, %p1071_p10 }
  0x3a   :  { %1079 = shalt.err (!%p1076_p12)
}
  0x3b   :  { %s1080_s1 = scalar_lea.vmem %s1211_s30, 2048  ;;  %p1085_p0 = scmp.lt.s32.totalorder %s1211_s30, %s1211_s30 }
  0x3c   :  { %p1081_p13 = scmp.ne.s32.totalorder %s1211_s30, %s1080_s1  ;;  %p1086_p1 = scmp.lt.s32.totalorder %s1080_s1, %s1080_s1 }
  0x3e   :  { %p1087_p2 = por %p1086_p1, %p1085_p0 }
  0x40   :  { %p1088_p3 = pnand %p1087_p2, %p1081_p13 }
  0x42   :  { %1091 = shalt.err (!%p1088_p3)
}
  0x43   :  { %s1128_s2 = smov 128   ;;  %s1129_s13 = smov 8  }
  0x44   :  { %67 = dma.hbm_to_vmem [thread:$0]  %s1287_s5, 2048, %s1211_s30, [#allocation10], %s1128_s2, %s1128_s2, %s1129_s13  }
  0x45   :  { %1114 = dma.done.wait [#allocation4], 1024  }
  0x46   :  { %1115 = vsyncadd [#allocation4], 4294966272 }
  0x47   :  { %1116 = dma.done.wait [#allocation7], 2048  }
  0x48   :  { %1117 = vsyncadd [#allocation7], 4294965248 }
  0x49   :  { %1118 = dma.done.wait [#allocation10], 2048  }
  0x4a   :  { %1119 = vsyncadd [#allocation10], 4294965248  ;;  %v980_v0 = vld [vmem:[#allocation6] sm:$0xff]   ;;  %v981_v1 = vld [vmem:[#allocation6 + $0x8] sm:$0xff]   ;;  %v1130_v48 = vmov 0.0|0.0   ;;  %vm1131_vm0 = vmmov 0  }
  0x4b   :  { %786 = vmatprep.subr.bf16.mxu0 %v980_v0  ;;  %v982_v2 = vld [vmem:[#allocation6 + $0x10] sm:$0xff]   ;;  %v983_v3 = vld [vmem:[#allocation6 + $0x18] sm:$0xff]   ;;  %v988_v4 = vld [vmem:[#allocation3] sm:$0xff]   ;;  %v1132_v49 = vmov 0.0   ;;  %s1133_s8 = smov [#allocation11]  }
  0x4c   :  { %787 = vmatpush3.bf16.msra.mxu0 %v980_v0  ;;  %802 = vmatprep.mubr.bf16.mxu0 %v988_v4  ;;  %v984_v5 = vld [vmem:[#allocation6 + $0x20] sm:$0xff]   ;;  %v985_v6 = vld [vmem:[#allocation6 + $0x28] sm:$0xff]   ;;  %v986_v9 = vld [vmem:[#allocation6 + $0x30] sm:$0xff]   ;;  %s683_s9 = sshll.u32 %s1133_s8, 4  ;;  %s684_s9 = int_to_ptr.vmem [resolvable:$true] %s683_s9 }
  0x4d   :  { %788 = vmatprep.subr.bf16.mxu0 %v981_v1  ;;  %v996_v7 = vld [vmem:[#allocation8] sm:$0xff]   ;;  %v997_v8 = vld [vmem:[#allocation8 + $0x8] sm:$0xff]   ;;  %v998_v10 = vld [vmem:[#allocation8 + $0x10] sm:$0xff]   ;;  %s1092_s10 = scalar_lea.vmem %s684_s9, 128  ;;  %p1097_p5 = scmp.lt.s32.totalorder %s684_s9, %s684_s9 }
  0x4e   :  { %818 = vmatprep.subr.bf16.mxu1 %v996_v7  ;;  %v987_v11 = vld [vmem:[#allocation6 + $0x38] sm:$0xff]   ;;  %v1000_v13 = vld [vmem:[#allocation8 + $0x20] sm:$0xff]   ;;  %v989_v14 = vld [vmem:[#allocation3 + $0x8] sm:$0xff]   ;;  %p1093_p4 = scmp.ne.s32.totalorder %s684_s9, %s1092_s10  ;;  %p1098_p6 = scmp.lt.s32.totalorder %s1092_s10, %s1092_s10 }
  0x4f   :  { %819 = vmatpush3.bf16.msra.mxu1 %v996_v7  ;;  %v999_v12 = vld [vmem:[#allocation8 + $0x18] sm:$0xff]   ;;  %v990_v15 = vld [vmem:[#allocation3 + $0x10] sm:$0xff]   ;;  %v1001_v16 = vld [vmem:[#allocation8 + $0x28] sm:$0xff]  }
  0x50   :  { %789 = vmatpush3.bf16.msra.mxu0 %v981_v1  ;;  %820 = vmatprep.subr.bf16.mxu1 %v997_v8  ;;  %v1002_v17 = vld [vmem:[#allocation8 + $0x30] sm:$0xff]   ;;  %v991_v18 = vld [vmem:[#allocation3 + $0x18] sm:$0xff]   ;;  %v992_v19 = vld [vmem:[#allocation3 + $0x20] sm:$0xff]   ;;  %p1099_p7 = por %p1098_p6, %p1097_p5 }
  0x51   :  { %790 = vmatprep.subr.bf16.mxu0 %v982_v2  ;;  %v993_v20 = vld [vmem:[#allocation3 + $0x28] sm:$0xff]   ;;  %v994_v21 = vld [vmem:[#allocation3 + $0x30] sm:$0xff]   ;;  %v995_v22 = vld [vmem:[#allocation3 + $0x38] sm:$0xff]  }
  0x52   :  { %v1003_v23 = vld [vmem:[#allocation8 + $0x38] sm:$0xff]   ;;  %v583_v50 = vld [vmem:[#allocation9] sm:$0xff]  ;;  %v584_v51 = vld [vmem:[#allocation9 + $0x8] sm:$0xff]  ;;  %p1100_p8 = pnand %p1099_p7, %p1093_p4 }
  0x53   :  { %821 = vmatpush3.bf16.msra.mxu1 %v997_v8  ;;  %v585_v52 = vld [vmem:[#allocation9 + $0x10] sm:$0xff]  ;;  %v945_v53 = vpack.c.bf16 %v584_v51, %v583_v50  ;;  %v586_v54 = vld [vmem:[#allocation9 + $0x18] sm:$0xff]  ;;  %v587_v56 = vld [vmem:[#allocation9 + $0x20] sm:$0xff] }
  0x54   :  { %791 = vmatpush3.bf16.msra.mxu0 %v982_v2  ;;  %822 = vmatprep.subr.bf16.mxu1 %v998_v10  ;;  %v948_v55 = vpack.c.bf16 %v586_v54, %v585_v52  ;;  %v588_v57 = vld [vmem:[#allocation9 + $0x28] sm:$0xff]  ;;  %v589_v59 = vld [vmem:[#allocation9 + $0x30] sm:$0xff]  ;;  %v590_v60 = vld [vmem:[#allocation9 + $0x38] sm:$0xff] }
  0x55   :  { %792 = vmatprep.subr.bf16.mxu0 %v983_v3  ;;  %v951_v58 = vpack.c.bf16 %v588_v57, %v587_v56  ;;  %v954_v61 = vpack.c.bf16 %v590_v60, %v589_v59  ;;  %v591_v62 = vld [vmem:[#allocation9 + $0x40] sm:$0xff]  ;;  %v592_v63 = vld [vmem:[#allocation9 + $0x48] sm:$0xff]  ;;  %v593_v1 = vld [vmem:[#allocation9 + $0x50] sm:$0xff] }
  0x56   :  { %v957_v0 = vpack.c.bf16 %v592_v63, %v591_v62  ;;  %v594_v2 = vld [vmem:[#allocation9 + $0x58] sm:$0xff]  ;;  %v595_v4 = vld [vmem:[#allocation9 + $0x60] sm:$0xff]  ;;  %v597_v7 = vld [vmem:[#allocation9 + $0x70] sm:$0xff] }
  0x57   :  { %823 = vmatpush3.bf16.msra.mxu1 %v998_v10  ;;  %v598_v8 = vld [vmem:[#allocation9 + $0x78] sm:$0xff]  ;;  %v710_v10 = vld [vmem:[%s1285_s3] ss:$0 sm:$0xff] }
  0x58   :  { %793 = vmatpush3.bf16.msra.mxu0 %v983_v3  ;;  %824 = vmatprep.subr.bf16.mxu1 %v999_v12  ;;  %v960_v3 = vpack.c.bf16 %v594_v2, %v593_v1 }
  0x59   :  { %794 = vmatprep.subr.bf16.mxu0 %v984_v5 }
  0x5b   :  { %825 = vmatpush3.bf16.msra.mxu1 %v999_v12 }
  0x5c   :  { %795 = vmatpush3.bf16.msra.mxu0 %v984_v5  ;;  %826 = vmatprep.subr.bf16.mxu1 %v1000_v13  ;;  %v596_v5 = vld [vmem:[#allocation9 + $0x68] sm:$0xff] }
  0x5d   :  { %796 = vmatprep.subr.bf16.mxu0 %v985_v6 }
  0x5f   :  { %827 = vmatpush3.bf16.msra.mxu1 %v1000_v13 }
  0x60   :  { %797 = vmatpush3.bf16.msra.mxu0 %v985_v6  ;;  %828 = vmatprep.subr.bf16.mxu1 %v1001_v16  ;;  %v963_v6 = vpack.c.bf16 %v596_v5, %v595_v4  ;;  %v506_v4 = vld [vmem:[%s1286_s4] sm:$0xff] }
  0x61   :  { %798 = vmatprep.subr.bf16.mxu0 %v986_v9 }
  0x63   :  { %829 = vmatpush3.bf16.msra.mxu1 %v1001_v16 }
  0x64   :  { %799 = vmatpush3.bf16.msra.mxu0 %v986_v9  ;;  %830 = vmatprep.subr.bf16.mxu1 %v1002_v17  ;;  %v966_v9 = vpack.c.bf16 %v598_v8, %v597_v7  ;;  %v719_v7 = vld [vmem:[%s1288_s6] ss:$0 sm:$0xff] }
  0x65   :  { %800 = vmatprep.subr.bf16.mxu0 %v987_v11 }
  0x67   :  { %831 = vmatpush3.bf16.msra.mxu1 %v1002_v17 }
  0x68   :  { %801 = vmatpush3.bf16.msra.mxu0 %v987_v11  ;;  %832 = vmatprep.subr.bf16.mxu1 %v1003_v23 }
  0x69   :  { %920 = vmatprep.subr.bf16.mxu0 %v1130_v48 }
  0x6b   :  { %803 = vmatmul.mubr.bf16.vlgmr.msra.gmra.mrb[0].mxu0 %v989_v14  ;;  %833 = vmatpush3.bf16.msra.mxu1 %v1003_v23 }
  0x6c   :  { %806 = vmatprep.mubr.bf16.mxu0 %v990_v15  ;;  %944 = vmatprep.subr.bf16.mxu1 %v1130_v48 }
  0x73   :  { %807 = vmatmul.mubr.bf16.gmra.mrb[4].mxu0 %v991_v18 }
  0x74   :  { %810 = vmatprep.mubr.bf16.mxu0 %v992_v19 }
  0x7b   :  { %811 = vmatmul.mubr.bf16.gmra.mrb[8].mxu0 %v993_v20 }
  0x7c   :  { %814 = vmatprep.mubr.bf16.mxu0 %v994_v21 }
  0x83   :  { %815 = vmatmul.mubr.bf16.gmra.mrb[12].mxu0 %v995_v22 }
  0x84   :  { %882 = vmatprep.mubr.msk.f32.mxu0 %vm1131_vm0, %v1132_v49 }
 0x13e   :  { %v804_v24 = vpop.f32.mrb[0].mxu0 }
 0x13f   :  { %v250_v25 = vpop.f32.mrb[1].mxu0 }
 0x140   :  { %v805_v26 = vpop.f32.mrb[2].mxu0 }
 0x141   :  { %v314_v27 = vpack.c.bf16 %v805_v26, %v804_v24  ;;  %v253_v28 = vpop.f32.mrb[3].mxu0 }
 0x142   :  { %v313_v29 = vpack.c.bf16 %v253_v28, %v250_v25 }
 0x144   :  { %834 = vmatprep.mubr.bf16.mxu1 %v313_v29 }
 0x145   :  { %835 = vmatmul.mubr.bf16.vlgmr.msra.gmra.mrb[0].mxu1 %v314_v27 }
 0x146   :  { %v808_v30 = vpop.f32.mrb[4].mxu0  ;;  %946 = vmatpush3.bf16.msra.mxu1 %v945_v53 }
 0x147   :  { %v266_v31 = vpop.f32.mrb[5].mxu0  ;;  %947 = vmatprep.subr.bf16.mxu1 %v1130_v48 }
 0x148   :  { %v809_v32 = vpop.f32.mrb[6].mxu0 }
 0x149   :  { %v316_v33 = vpack.c.bf16 %v809_v32, %v808_v30  ;;  %v269_v34 = vpop.f32.mrb[7].mxu0 }
 0x14a   :  { %v315_v35 = vpack.c.bf16 %v269_v34, %v266_v31  ;;  %949 = vmatpush3.bf16.msra.mxu1 %v948_v55 }
 0x14b   :  { %950 = vmatprep.subr.bf16.mxu1 %v1130_v48 }
 0x14c   :  { %838 = vmatprep.mubr.bf16.mxu1 %v315_v35 }
 0x14d   :  { %839 = vmatmul.mubr.bf16.gmra.mrb[4].mxu1 %v316_v33 }
 0x14e   :  { %v812_v36 = vpop.f32.mrb[8].mxu0  ;;  %952 = vmatpush3.bf16.msra.mxu1 %v951_v58 }
 0x14f   :  { %v282_v37 = vpop.f32.mrb[9].mxu0  ;;  %953 = vmatprep.subr.bf16.mxu1 %v1130_v48 }
 0x150   :  { %v813_v38 = vpop.f32.mrb[10].mxu0 }
 0x151   :  { %v318_v39 = vpack.c.bf16 %v813_v38, %v812_v36  ;;  %v285_v40 = vpop.f32.mrb[11].mxu0 }
 0x152   :  { %v317_v41 = vpack.c.bf16 %v285_v40, %v282_v37  ;;  %955 = vmatpush3.bf16.msra.mxu1 %v954_v61 }
 0x153   :  { %956 = vmatprep.subr.bf16.mxu1 %v1130_v48 }
 0x154   :  { %842 = vmatprep.mubr.bf16.mxu1 %v317_v41 }
 0x155   :  { %843 = vmatmul.mubr.bf16.gmra.mrb[8].mxu1 %v318_v39 }
 0x156   :  { %v816_v42 = vpop.f32.mrb[12].mxu0  ;;  %958 = vmatpush3.bf16.msra.mxu1 %v957_v0 }
 0x157   :  { %v298_v43 = vpop.f32.mrb[13].mxu0  ;;  %959 = vmatprep.subr.bf16.mxu1 %v1130_v48 }
 0x158   :  { %v817_v44 = vpop.f32.mrb[14].mxu0 }
 0x159   :  { %v320_v45 = vpack.c.bf16 %v817_v44, %v816_v42  ;;  %v301_v46 = vpop.f32.mrb[15].mxu0 }
 0x15a   :  { %v319_v47 = vpack.c.bf16 %v301_v46, %v298_v43  ;;  %961 = vmatpush3.bf16.msra.mxu1 %v960_v3 }
 0x15b   :  { %962 = vmatprep.subr.bf16.mxu1 %v1130_v48 }
 0x15c   :  { %846 = vmatprep.mubr.bf16.mxu1 %v319_v47 }
 0x15d   :  { %847 = vmatmul.mubr.bf16.gmra.mrb[12].mxu1 %v320_v45 }
 0x15e   :  { %917 = vmatprep.mubr.msk.f32.mxu1 %vm1131_vm0, %v1132_v49  ;;  %964 = vmatpush3.bf16.msra.mxu1 %v963_v6 }
 0x15f   :  { %965 = vmatprep.subr.bf16.mxu1 %v1130_v48 }
 0x162   :  { %967 = vmatpush3.bf16.msra.mxu1 %v966_v9 }
 0x218   :  { %v836_v11 = vpop.f32.mrb[0].mxu1 }
 0x219   :  { %v435_v12 = vadd.f32 %v836_v11, %v710_v10  ;;  %v426_v13 = vpop.f32.mrb[1].mxu1 }
 0x21a   :  { %v427_v14 = vadd.f32 %v710_v10, %v426_v13  ;;  %v837_v15 = vpop.f32.mrb[2].mxu1 }
 0x21b   :  { %v438_v16 = vadd.f32 %v837_v15, %v710_v10  ;;  %v429_v17 = vpop.f32.mrb[3].mxu1  ;;  %v491_v19 = vmax.f32 %v435_v12, 0.0 }
 0x21c   :  { %v430_v18 = vadd.f32 %v710_v10, %v429_v17  ;;  %v489_v21 = vmax.f32 %v427_v14, 0.0 }
 0x21d   :  { %v492_v20 = vmax.f32 %v438_v16, 0.0 }
 0x21e   :  { %v490_v22 = vmax.f32 %v430_v18, 0.0 }
 0x21f   :  { %v924_v23 = vpack.c.bf16 %v492_v20, %v491_v19 }
 0x220   :  { %v921_v24 = vpack.c.bf16 %v490_v22, %v489_v21  ;;  %v840_v25 = vpop.f32.mrb[4].mxu1 }
 0x221   :  { %v451_v26 = vadd.f32 %v840_v25, %v710_v10  ;;  %v442_v27 = vpop.f32.mrb[5].mxu1 }
 0x222   :  { %v443_v28 = vadd.f32 %v710_v10, %v442_v27  ;;  %v841_v29 = vpop.f32.mrb[6].mxu1  ;;  %922 = vmatpush3.bf16.msra.mxu0 %v921_v24 }
 0x223   :  { %v454_v30 = vadd.f32 %v841_v29, %v710_v10  ;;  %v445_v31 = vpop.f32.mrb[7].mxu1  ;;  %923 = vmatprep.subr.bf16.mxu0 %v1130_v48  ;;  %v495_v33 = vmax.f32 %v451_v26, 0.0 }
 0x224   :  { %v446_v32 = vadd.f32 %v710_v10, %v445_v31  ;;  %v493_v35 = vmax.f32 %v443_v28, 0.0 }
 0x225   :  { %v496_v34 = vmax.f32 %v454_v30, 0.0 }
 0x226   :  { %v494_v36 = vmax.f32 %v446_v32, 0.0  ;;  %925 = vmatpush3.bf16.msra.mxu0 %v924_v23 }
 0x227   :  { %v930_v37 = vpack.c.bf16 %v496_v34, %v495_v33  ;;  %926 = vmatprep.subr.bf16.mxu0 %v1130_v48 }
 0x228   :  { %v927_v38 = vpack.c.bf16 %v494_v36, %v493_v35  ;;  %v844_v39 = vpop.f32.mrb[8].mxu1 }
 0x229   :  { %v467_v40 = vadd.f32 %v844_v39, %v710_v10  ;;  %v458_v41 = vpop.f32.mrb[9].mxu1 }
 0x22a   :  { %v459_v42 = vadd.f32 %v710_v10, %v458_v41  ;;  %v845_v43 = vpop.f32.mrb[10].mxu1  ;;  %928 = vmatpush3.bf16.msra.mxu0 %v927_v38 }
 0x22b   :  { %v470_v44 = vadd.f32 %v845_v43, %v710_v10  ;;  %v461_v45 = vpop.f32.mrb[11].mxu1  ;;  %929 = vmatprep.subr.bf16.mxu0 %v1130_v48  ;;  %v499_v47 = vmax.f32 %v467_v40, 0.0 }
 0x22c   :  { %v462_v46 = vadd.f32 %v710_v10, %v461_v45  ;;  %v497_v50 = vmax.f32 %v459_v42, 0.0 }
 0x22d   :  { %v500_v49 = vmax.f32 %v470_v44, 0.0 }
 0x22e   :  { %v498_v51 = vmax.f32 %v462_v46, 0.0  ;;  %931 = vmatpush3.bf16.msra.mxu0 %v930_v37 }
 0x22f   :  { %v936_v52 = vpack.c.bf16 %v500_v49, %v499_v47  ;;  %932 = vmatprep.subr.bf16.mxu0 %v1130_v48 }
 0x230   :  { %v933_v53 = vpack.c.bf16 %v498_v51, %v497_v50  ;;  %v848_v54 = vpop.f32.mrb[12].mxu1 }
 0x231   :  { %v483_v55 = vadd.f32 %v848_v54, %v710_v10  ;;  %v474_v56 = vpop.f32.mrb[13].mxu1 }
 0x232   :  { %v475_v57 = vadd.f32 %v710_v10, %v474_v56  ;;  %v849_v58 = vpop.f32.mrb[14].mxu1  ;;  %934 = vmatpush3.bf16.msra.mxu0 %v933_v53 }
 0x233   :  { %v486_v59 = vadd.f32 %v849_v58, %v710_v10  ;;  %v477_v60 = vpop.f32.mrb[15].mxu1  ;;  %935 = vmatprep.subr.bf16.mxu0 %v1130_v48  ;;  %v503_v62 = vmax.f32 %v483_v55, 0.0 }
 0x234   :  { %v478_v61 = vadd.f32 %v710_v10, %v477_v60  ;;  %v501_v0 = vmax.f32 %v475_v57, 0.0 }
 0x235   :  { %v504_v63 = vmax.f32 %v486_v59, 0.0 }
 0x236   :  { %v502_v1 = vmax.f32 %v478_v61, 0.0  ;;  %937 = vmatpush3.bf16.msra.mxu0 %v936_v52 }
 0x237   :  { %v942_v2 = vpack.c.bf16 %v504_v63, %v503_v62  ;;  %938 = vmatprep.subr.bf16.mxu0 %v1130_v48 }
 0x238   :  { %v939_v3 = vpack.c.bf16 %v502_v1, %v501_v0 }
 0x23a   :  { %940 = vmatpush3.bf16.msra.mxu0 %v939_v3 }
 0x23b   :  { %941 = vmatprep.subr.bf16.mxu0 %v1130_v48 }
 0x23e   :  { %943 = vmatpush3.bf16.msra.mxu0 %v942_v2 }
 0x241   :  { %883 = vmatmul.mubr.f32.vlgmr.msra.gmra.mrb[16].mxu0 %v506_v4 }
 0x314   :  { %v573_v5 = vpop.f32.mrb[16].mxu0 }
 0x315   :  { %v884_v6 = vpop.f32.mrb[17].mxu0  ;;  %918 = vmatmul.mubr.f32.vlgmr.msra.gmra.mrb[16].mxu1 %v573_v5 }
 0x3e8   :  { %v672_v8 = vpop.f32.mrb[16].mxu1 }
 0x3e9   :  { %v673_v9 = vadd.f32 %v719_v7, %v672_v8  ;;  %v919_v10 = vpop.f32.mrb[17].mxu1 }
 0x3eb   :  { %676 = vst [vmem:[#allocation11] sm:$0xff] %v673_v9 }
 0x3ec   :  { %1103 = shalt.err (!%p1100_p8)
}
 0x3ed   :  { %s1104_s12 = scalar_lea.hbm %s1289_s7, 128 }
 0x3ee   :  { %p1105_p9 = scmp.ne.s32.totalorder %s1289_s7, %s1104_s12  ;;  %p1108_p10 = scmp.lt.u32.totalorder %s1104_s12, %s1289_s7 }
 0x3f0   :  { %p1110_p11 = pnand %p1108_p10, %p1105_p9 }
 0x3f2   :  { %1113 = shalt.err (!%p1110_p11)
}
 0x3f3   :  { %686 = dma.vmem_to_hbm [thread:$0]  %s684_s9, 128, %s1289_s7, [#allocation5]  }
 0x3f4   :  { %1120 = dma.done.wait [#allocation5], 128  }
 0x3f5   :  { %1121 = vsyncadd [#allocation5], 4294967168 }
 0x3f6   :  { %690 = vsyncpa [#allocation4], 1 }
 0x3f7   :  { %691 = vsyncpa [#allocation7], 1 }
 0x3f8   :  { %692 = vsyncpa [#allocation10], 1 }
 0x3f9   :  { %693 = vsyncpa [#allocation5], 1 }

</bundles_post_ra>
